<compile_context>
chip_gen: v6e
topology: v6e:2x2x1
jax: 0.10.0
libtpu: 0.0.40
codegen_flags: <defaults>
</compile_context>

<pallas_src>
import functools

import jax
import jax.numpy as jnp
from jax.experimental import pallas as pl
from jax.experimental.pallas import tpu as pltpu

_LANES = 128
_SUBLANES = 8
_MAX_BLOCK_ROWS = 4096        # (4096, 128) f32 = 2 MiB per block
_FAST_PATH_ELEMS = 32 * 1024  # < 128 KiB of f32: plain XLA beats kernel overhead


def _cdiv(a: int, b: int) -> int:
    return -(-a // b)


def _epe_kernel(pred_ref, targ_ref, out_ref, *, block_rows, rows):
    """Accumulate per-lane partial sums of (target - pred)^2.

    pred_ref, targ_ref : VMEM (block_rows, 128) tiles
    out_ref            : VMEM (8, 128) partial-sum accumulator, output-resident
                         across the whole (single, "arbitrary") grid axis.
    """
    i = pl.program_id(0)

    @pl.when(i == 0)
    def _():
        out_ref[...] = jnp.zeros_like(out_ref)

    p = pred_ref[...]
    t = targ_ref[...]
    if p.dtype != jnp.float32:     # only cast when inputs are not f32 (e.g. bf16)
        p = p.astype(jnp.float32)
        t = t.astype(jnp.float32)
    d = t - p
    sq = d * d

    def accumulate(vals):
        # Collapse the block to one (8, 128) vreg with plain VALU adds (no XLU);
        # the single expensive cross-lane reduction happens once in the wrapper.
        out_ref[...] += vals.reshape(block_rows // _SUBLANES, _SUBLANES, _LANES).sum(axis=0)

    if rows % block_rows != 0:
        # Only the final partial block needs masking; interior blocks skip the
        # iota/compare/select entirely (gated at runtime with pl.when).
        row0 = i * block_rows
        is_partial = row0 + block_rows > rows

        @pl.when(is_partial)
        def _():
            # Rows past the true end read undefined VMEM contents (possibly
            # NaN/Inf); they are only ever consumed through this select, which
            # zeroes them before accumulation.
            row_ids = row0 + jax.lax.broadcasted_iota(jnp.int32, sq.shape, 0)
            accumulate(jnp.where(row_ids < rows, sq, jnp.float32(0.0)))

        @pl.when(jnp.logical_not(is_partial))
        def _():
            accumulate(sq)
    else:
        accumulate(sq)


def epe_loss(pred: jax.Array, target: jax.Array) -> jax.Array:
    """EPELoss forward: sqrt(sum((target - pred)**2)) as a 0-d float32 scalar."""
    assert pred.shape == target.shape, "pred/target shape mismatch"

    n = pred.size
    p_flat = pred.reshape(-1)
    t_flat = target.reshape(-1)

    itemsize = jnp.dtype(pred.dtype).itemsize
    # Sublane minimum per dtype packing: 8 (f32), 16 (bf16), 32 (8-bit).
    sub = _SUBLANES * max(1, 4 // itemsize)
    granule = sub * _LANES

    n_aligned = n - (n % granule)

    # Small-input fast path: fixed pallas_call machinery dominates below ~128 KiB.
    if n_aligned == 0 or n < _FAST_PATH_ELEMS:
        d = (t_flat - p_flat).astype(jnp.float32)
        return jnp.sqrt(jnp.sum(d * d))

    # Remainder (< granule elements) summed in plain XLA; avoids jnp.pad's full
    # HBM copy of both inputs on non-aligned element counts.
    tail_sum = jnp.float32(0.0)
    if n_aligned < n:
        d_tail = (t_flat[n_aligned:] - p_flat[n_aligned:]).astype(jnp.float32)
        tail_sum = jnp.sum(d_tail * d_tail)

    rows = n_aligned // _LANES                      # multiple of `sub`
    p2d = p_flat[:n_aligned].reshape(rows, _LANES)  # contiguous reshape: no copy
    t2d = t_flat[:n_aligned].reshape(rows, _LANES)

    max_rows = _MAX_BLOCK_ROWS - (_MAX_BLOCK_ROWS % sub)
    block_rows = min(max_rows, rows)                # always a multiple of `sub`
    num_blocks = _cdiv(rows, block_rows)

    kernel = functools.partial(_epe_kernel, block_rows=block_rows, rows=rows)

    partials = pl.pallas_call(
        kernel,
        out_shape=jax.ShapeDtypeStruct((_SUBLANES, _LANES), jnp.float32),
        grid_spec=pltpu.PrefetchScalarGridSpec(
            num_scalar_prefetch=0,
            grid=(num_blocks,),
            in_specs=[
                pl.BlockSpec((block_rows, _LANES), lambda i: (i, 0)),
                pl.BlockSpec((block_rows, _LANES), lambda i: (i, 0)),
            ],
            out_specs=pl.BlockSpec((_SUBLANES, _LANES), lambda i: (0, 0)),
        ),
        compiler_params=pltpu.CompilerParams(
            dimension_semantics=("arbitrary",),
        ),
        cost_estimate=pl.CostEstimate(
            flops=3 * n_aligned,
            transcendentals=0,
            bytes_accessed=2 * n_aligned * itemsize + _SUBLANES * _LANES * 4,
        ),
    )(p2d, t2d)

    # One cheap cross-lane reduction + sqrt outside the kernel.
    return jnp.sqrt(jnp.sum(partials) + tail_sum)


def _ref(pred, target):
    d = (target - pred).astype(jnp.float32)
    return jnp.sqrt(jnp.sum(d * d))


if __name__ == "__main__":
    key = jax.random.PRNGKey(0)
    k1, k2, k3, k4, k5, k6, k7, k8 = jax.random.split(key, 8)

    # 1) Flow-style small inputs (NCHW), matching the module's typical use:
    #    batch=2, channels=4, 16x16 -> exercises the small-input fast path.
    pred = jax.random.normal(k1, (2, 4, 16, 16), dtype=jnp.float32)
    target = jax.random.normal(k2, (2, 4, 16, 16), dtype=jnp.float32)
    loss = jax.block_until_ready(epe_loss(pred, target))
    assert jnp.allclose(loss, _ref(pred, target), rtol=1e-5, atol=1e-5)

    # 2) Aligned mid-size input -> exercises the Pallas path (single block).
    pred2 = jax.random.normal(k3, (2, 4, 64, 64), dtype=jnp.float32)
    target2 = jax.random.normal(k4, (2, 4, 64, 64), dtype=jnp.float32)
    loss2 = jax.block_until_ready(epe_loss(pred2, target2))
    assert jnp.allclose(loss2, _ref(pred2, target2), rtol=1e-5, atol=1e-5)

    # 3) Non-1024-aligned element count -> Pallas prefix + XLA tail sum.
    pred3 = jax.random.normal(k5, (2, 5, 63, 65), dtype=jnp.float32)
    target3 = jax.random.normal(k6, (2, 5, 63, 65), dtype=jnp.float32)
    loss3 = jax.block_until_ready(epe_loss(pred3, target3))
    assert jnp.allclose(loss3, _ref(pred3, target3), rtol=1e-5, atol=1e-5)

    # 4) rows not a multiple of block_rows -> exercises the pl.when-gated
    #    in-kernel mask on the final partial block.
    pred4 = jax.random.normal(k7, (2, 4, 300, 256), dtype=jnp.float32)
    target4 = jax.random.normal(k8, (2, 4, 300, 256), dtype=jnp.float32)
    loss4 = jax.block_until_ready(epe_loss(pred4, target4))
    assert jnp.allclose(loss4, _ref(pred4, target4), rtol=1e-5, atol=1e-5)

    print("KERNEL_OK")
</pallas_src>

<mosaic_0001>
module attributes {stable_mosaic.version = 11 : i64} {
  func.func @_epe_kernel(%arg0: i32, %arg1: memref<256x128xf32, #tpu.memory_space<vmem>>, %arg2: memref<256x128xf32, #tpu.memory_space<vmem>>, %arg3: memref<8x128xf32, #tpu.memory_space<vmem>>) attributes {dimension_semantics = [#tpu.dimension_semantics<arbitrary>], iteration_bounds = array<i64: 1>, scalar_prefetch = 0 : i64, scratch_operands = 0 : i64, tpu.core_type = #tpu.core_type<tc>, window_params = [{transform_indices = @transform_0, window_bounds = array<i64: 256, 128>}, {transform_indices = @transform_1, window_bounds = array<i64: 256, 128>}, {pipeline_mode = #tpu.pipeline_mode<synchronous>, transform_indices = @transform_2, window_bounds = array<i64: 8, 128>}]} {
    %c0_i32 = arith.constant 0 : i32
    %0 = arith.cmpi eq, %arg0, %c0_i32 : i32
    %1 = arith.extui %0 : i1 to i32
    %c0_i32_0 = arith.constant 0 : i32
    %2 = arith.cmpi ne, %1, %c0_i32_0 : i32
    scf.if %2 {
      %cst_8 = arith.constant 0.000000e+00 : f32
      %12 = vector.broadcast %cst_8 : f32 to vector<8x128xf32>
      %c0_9 = arith.constant 0 : index
      %c0_10 = arith.constant 0 : index
      %13 = vector.load %arg3[%c0_9, %c0_10] : memref<8x128xf32, #tpu.memory_space<vmem>>, vector<8x128xf32>
      tpu.vector_store %arg3[%c0_9, %c0_10], %12 {strides = array<i32>} : memref<8x128xf32, #tpu.memory_space<vmem>>, vector<8x128xf32>,
    } else {
    }
    %c0 = arith.constant 0 : index
    %c0_1 = arith.constant 0 : index
    %3 = vector.load %arg1[%c0, %c0_1] : memref<256x128xf32, #tpu.memory_space<vmem>>, vector<256x128xf32>
    %c0_2 = arith.constant 0 : index
    %c0_3 = arith.constant 0 : index
    %4 = vector.load %arg2[%c0_2, %c0_3] : memref<256x128xf32, #tpu.memory_space<vmem>>, vector<256x128xf32>
    %5 = arith.subf %4, %3 : vector<256x128xf32>
    %6 = arith.mulf %5, %5 : vector<256x128xf32>
    %c0_4 = arith.constant 0 : index
    %c0_5 = arith.constant 0 : index
    %7 = vector.load %arg3[%c0_4, %c0_5] : memref<8x128xf32, #tpu.memory_space<vmem>>, vector<8x128xf32>
    %8 = vector.shape_cast %6 : vector<256x128xf32> to vector<32x8x128xf32>
    %cst = arith.constant dense<0.000000e+00> : vector<8x128xf32>
    %9 = vector.multi_reduction <add>, %8, %cst [0] : vector<32x8x128xf32> to vector<8x128xf32>
    %10 = arith.addf %7, %9 : vector<8x128xf32>
    %c0_6 = arith.constant 0 : index
    %c0_7 = arith.constant 0 : index
    %11 = vector.load %arg3[%c0_6, %c0_7] : memref<8x128xf32, #tpu.memory_space<vmem>>, vector<8x128xf32>
    tpu.vector_store %arg3[%c0_6, %c0_7], %10 {strides = array<i32>} : memref<8x128xf32, #tpu.memory_space<vmem>>, vector<8x128xf32>,
    return
  }
  func.func @transform_0(%arg0: i32) -> (i32, i32) {
    %c0_i32 = arith.constant 0 : i32
    %c0_i32_0 = arith.constant 0 : i32
    return %arg0, %c0_i32 : i32, i32
  }
  func.func @transform_1(%arg0: i32) -> (i32, i32) {
    %c0_i32 = arith.constant 0 : i32
    %c0_i32_0 = arith.constant 0 : i32
    return %arg0, %c0_i32 : i32, i32
  }
  func.func @transform_2(%arg0: i32) -> (i32, i32) {
    %c0_i32 = arith.constant 0 : i32
    %c0_i32_0 = arith.constant 0 : i32
    %c0_i32_1 = arith.constant 0 : i32
    return %c0_i32, %c0_i32_0 : i32, i32
  }
}

</mosaic_0001>

<bundles_post_ra>
// kernel: tpu_custom_call.1
= control target key start
LH: loop header
LB: loop body
LE: loop exit
PB: predicated region body
PF: predicated region fallthrough
CT: control target
= control target key end

     0   :  { %7 = vsyncpa [#allocation3], 0  ;;  %s324_s0 = inlined_call_operand.hbm [shape: f32[256,128], index: 0, kind: input, shape index: {}]   ;;  %s325_s1 = inlined_call_operand.hbm [shape: f32[256,128], index: 1, kind: input, shape index: {}]   ;;  %s326_s2 = inlined_call_operand.hbm [shape: f32[8,128], index: 2, kind: output, shape index: {}]  }
   0x1   :  { %8 = vsyncpa [#allocation6], 0 }
   0x2   :  { %9 = vsyncpa [#allocation4], 0  ;;  %s295_s9 = smov [#allocation2]  }
   0x3   :  { %s15_s10 = sshll.u32 %s295_s9, 4  ;;  %s16_s10 = int_to_ptr.vmem [resolvable:$true] %s15_s10 }
   0x4   :  { %s237_s11 = scalar_lea.vmem %s16_s10, 4096  ;;  %p242_p1 = scmp.lt.s32.totalorder %s16_s10, %s16_s10 }
   0x5   :  { %p238_p0 = scmp.ne.s32.totalorder %s16_s10, %s237_s11  ;;  %p243_p2 = scmp.lt.s32.totalorder %s237_s11, %s237_s11 }
   0x7   :  { %p244_p3 = por %p243_p2, %p242_p1 }
   0x9   :  { %p245_p4 = pnand %p244_p3, %p238_p0 }
   0xb   :  { %248 = shalt.err (!%p245_p4)
}
   0xc   :  { %s296_s12 = smov 128   ;;  %s297_s13 = smov 8  }
   0xd   :  { %21 = dma.hbm_to_vmem [thread:$0]  %s324_s0, 4096, %s16_s10, [#allocation3], %s296_s12, %s296_s12, %s297_s13  }
   0xe   :  { %s298_s16 = smov [#allocation5]  }
   0xf   :  { %s27_s17 = sshll.u32 %s298_s16, 4  ;;  %s28_s17 = int_to_ptr.vmem [resolvable:$true] %s27_s17 }
  0x10   :  { %s257_s18 = scalar_lea.vmem %s28_s17, 4096  ;;  %p262_p6 = scmp.lt.s32.totalorder %s28_s17, %s28_s17 }
  0x11   :  { %p258_p5 = scmp.ne.s32.totalorder %s28_s17, %s257_s18  ;;  %p263_p7 = scmp.lt.s32.totalorder %s257_s18, %s257_s18 }
  0x13   :  { %p264_p8 = por %p263_p7, %p262_p6 }
  0x15   :  { %p265_p9 = pnand %p264_p8, %p258_p5 }
  0x17   :  { %268 = shalt.err (!%p265_p9)
}
  0x18   :  { %33 = dma.hbm_to_vmem [thread:$0]  %s325_s1, 4096, %s28_s17, [#allocation6], %s296_s12, %s296_s12, %s297_s13  }
  0x19   :  { %289 = dma.done.wait [#allocation3], 4096  }
  0x1a   :  { %290 = vsyncadd [#allocation3], 4294963200 }
  0x1b   :  { %291 = dma.done.wait [#allocation6], 4096  }
  0x1c   :  { %292 = vsyncadd [#allocation6], 4294963200  ;;  %v45_v0 = vld [vmem:[#allocation2] sm:$0xff]  ;;  %v46_v1 = vld [vmem:[#allocation2 + $0x8] sm:$0xff]  ;;  %s299_s0 = smov [#allocation7]  }
  0x1d   :  { %v77_v2 = vld [vmem:[#allocation5] sm:$0xff]  ;;  %v78_v3 = vld [vmem:[#allocation5 + $0x8] sm:$0xff]  ;;  %v47_v4 = vld [vmem:[#allocation2 + $0x10] sm:$0xff]  ;;  %s213_s1 = sshll.u32 %s299_s0, 4  ;;  %s214_s1 = int_to_ptr.vmem [resolvable:$true] %s213_s1 }
  0x1e   :  { %v79_v5 = vld [vmem:[#allocation5 + $0x10] sm:$0xff]  ;;  %v109_v6 = vsub.f32 %v77_v2, %v45_v0  ;;  %v110_v7 = vsub.f32 %v78_v3, %v46_v1  ;;  %v48_v8 = vld [vmem:[#allocation2 + $0x18] sm:$0xff]  ;;  %v49_v11 = vld [vmem:[#allocation2 + $0x20] sm:$0xff]  ;;  %s269_s21 = scalar_lea.vmem %s214_s1, 128  ;;  %p274_p11 = scmp.lt.s32.totalorder %s214_s1, %s214_s1 }
  0x1f   :  { %v80_v9 = vld [vmem:[#allocation5 + $0x18] sm:$0xff]  ;;  %v111_v10 = vsub.f32 %v79_v5, %v47_v4  ;;  %v81_v12 = vld [vmem:[#allocation5 + $0x20] sm:$0xff]  ;;  %v50_v16 = vld [vmem:[#allocation2 + $0x28] sm:$0xff]  ;;  %p270_p10 = scmp.ne.s32.totalorder %s214_s1, %s269_s21  ;;  %p275_p12 = scmp.lt.s32.totalorder %s269_s21, %s269_s21 }
  0x20   :  { %v112_v13 = vsub.f32 %v80_v9, %v48_v8  ;;  %v141_v14 = vmul.f32 %v109_v6, %v109_v6  ;;  %v142_v15 = vmul.f32 %v110_v7, %v110_v7  ;;  %v82_v17 = vld [vmem:[#allocation5 + $0x28] sm:$0xff]  ;;  %v113_v18 = vsub.f32 %v81_v12, %v49_v11  ;;  %v51_v20 = vld [vmem:[#allocation2 + $0x30] sm:$0xff]  ;;  %v52_v25 = vld [vmem:[#allocation2 + $0x38] sm:$0xff] }
  0x21   :  { %v143_v19 = vmul.f32 %v111_v10, %v111_v10  ;;  %v83_v21 = vld [vmem:[#allocation5 + $0x30] sm:$0xff]  ;;  %v114_v22 = vsub.f32 %v82_v17, %v50_v16  ;;  %v84_v26 = vld [vmem:[#allocation5 + $0x38] sm:$0xff]  ;;  %v53_v30 = vld [vmem:[#allocation2 + $0x40] sm:$0xff]  ;;  %p276_p13 = por %p275_p12, %p274_p11 }
  0x22   :  { %v144_v23 = vmul.f32 %v112_v13, %v112_v13  ;;  %v174_v24 = vadd.f32 %v142_v15, %v141_v14  ;;  %v115_v27 = vsub.f32 %v83_v21, %v51_v20  ;;  %v145_v28 = vmul.f32 %v113_v18, %v113_v18  ;;  %v85_v31 = vld [vmem:[#allocation5 + $0x40] sm:$0xff]  ;;  %v54_v35 = vld [vmem:[#allocation2 + $0x48] sm:$0xff]  ;;  %v55_v40 = vld [vmem:[#allocation2 + $0x50] sm:$0xff] }
  0x23   :  { %v116_v32 = vsub.f32 %v84_v26, %v52_v25  ;;  %v146_v33 = vmul.f32 %v114_v22, %v114_v22  ;;  %v86_v36 = vld [vmem:[#allocation5 + $0x48] sm:$0xff]  ;;  %v117_v37 = vsub.f32 %v85_v31, %v53_v30  ;;  %v87_v41 = vld [vmem:[#allocation5 + $0x50] sm:$0xff]  ;;  %v56_v45 = vld [vmem:[#allocation2 + $0x58] sm:$0xff]  ;;  %p277_p0 = pnand %p276_p13, %p270_p10 }
  0x24   :  { %v175_v29 = vadd.f32 %v174_v24, %v143_v19  ;;  %v147_v38 = vmul.f32 %v115_v27, %v115_v27  ;;  %v118_v42 = vsub.f32 %v86_v36, %v54_v35  ;;  %v88_v46 = vld [vmem:[#allocation5 + $0x58] sm:$0xff]  ;;  %v119_v47 = vsub.f32 %v87_v41, %v55_v40  ;;  %v57_v50 = vld [vmem:[#allocation2 + $0x60] sm:$0xff]  ;;  %v58_v55 = vld [vmem:[#allocation2 + $0x68] sm:$0xff] }
  0x25   :  { %v148_v43 = vmul.f32 %v116_v32, %v116_v32  ;;  %v149_v48 = vmul.f32 %v117_v37, %v117_v37  ;;  %v89_v51 = vld [vmem:[#allocation5 + $0x60] sm:$0xff]  ;;  %v120_v52 = vsub.f32 %v88_v46, %v56_v45  ;;  %v90_v56 = vld [vmem:[#allocation5 + $0x68] sm:$0xff]  ;;  %v59_v60 = vld [vmem:[#allocation2 + $0x70] sm:$0xff] }
  0x26   :  { %v176_v34 = vadd.f32 %v175_v29, %v144_v23  ;;  %v150_v53 = vmul.f32 %v118_v42, %v118_v42  ;;  %v121_v57 = vsub.f32 %v89_v51, %v57_v50  ;;  %v151_v58 = vmul.f32 %v119_v47, %v119_v47  ;;  %v91_v61 = vld [vmem:[#allocation5 + $0x70] sm:$0xff]  ;;  %v60_v1 = vld [vmem:[#allocation2 + $0x78] sm:$0xff]  ;;  %v61_v6 = vld [vmem:[#allocation2 + $0x80] sm:$0xff] }
  0x27   :  { %v122_v62 = vsub.f32 %v90_v56, %v58_v55  ;;  %v152_v63 = vmul.f32 %v120_v52, %v120_v52  ;;  %v92_v2 = vld [vmem:[#allocation5 + $0x78] sm:$0xff]  ;;  %v123_v3 = vsub.f32 %v91_v61, %v59_v60  ;;  %v93_v7 = vld [vmem:[#allocation5 + $0x80] sm:$0xff]  ;;  %v62_v11 = vld [vmem:[#allocation2 + $0x88] sm:$0xff] }
  0x28   :  { %v177_v39 = vadd.f32 %v176_v34, %v145_v28  ;;  %v153_v4 = vmul.f32 %v121_v57, %v121_v57  ;;  %v124_v8 = vsub.f32 %v92_v2, %v60_v1  ;;  %v94_v12 = vld [vmem:[#allocation5 + $0x88] sm:$0xff]  ;;  %v125_v13 = vsub.f32 %v93_v7, %v61_v6  ;;  %v63_v16 = vld [vmem:[#allocation2 + $0x90] sm:$0xff]  ;;  %v64_v21 = vld [vmem:[#allocation2 + $0x98] sm:$0xff] }
  0x29   :  { %v154_v9 = vmul.f32 %v122_v62, %v122_v62  ;;  %v155_v14 = vmul.f32 %v123_v3, %v123_v3  ;;  %v95_v17 = vld [vmem:[#allocation5 + $0x90] sm:$0xff]  ;;  %v126_v18 = vsub.f32 %v94_v12, %v62_v11  ;;  %v96_v22 = vld [vmem:[#allocation5 + $0x98] sm:$0xff]  ;;  %v65_v26 = vld [vmem:[#allocation2 + $0xa0] sm:$0xff] }
  0x2a   :  { %v178_v44 = vadd.f32 %v177_v39, %v146_v33  ;;  %v156_v19 = vmul.f32 %v124_v8, %v124_v8  ;;  %v127_v23 = vsub.f32 %v95_v17, %v63_v16  ;;  %v157_v24 = vmul.f32 %v125_v13, %v125_v13  ;;  %v97_v27 = vld [vmem:[#allocation5 + $0xa0] sm:$0xff]  ;;  %v66_v31 = vld [vmem:[#allocation2 + $0xa8] sm:$0xff]  ;;  %v67_v36 = vld [vmem:[#allocation2 + $0xb0] sm:$0xff] }
  0x2b   :  { %v128_v28 = vsub.f32 %v96_v22, %v64_v21  ;;  %v158_v29 = vmul.f32 %v126_v18, %v126_v18  ;;  %v98_v32 = vld [vmem:[#allocation5 + $0xa8] sm:$0xff]  ;;  %v129_v33 = vsub.f32 %v97_v27, %v65_v26  ;;  %v99_v37 = vld [vmem:[#allocation5 + $0xb0] sm:$0xff]  ;;  %v68_v41 = vld [vmem:[#allocation2 + $0xb8] sm:$0xff] }
  0x2c   :  { %v179_v49 = vadd.f32 %v178_v44, %v147_v38  ;;  %v159_v34 = vmul.f32 %v127_v23, %v127_v23  ;;  %v130_v38 = vsub.f32 %v98_v32, %v66_v31  ;;  %v100_v42 = vld [vmem:[#allocation5 + $0xb8] sm:$0xff]  ;;  %v69_v46 = vld [vmem:[#allocation2 + $0xc0] sm:$0xff]  ;;  %v70_v51 = vld [vmem:[#allocation2 + $0xc8] sm:$0xff] }
  0x2d   :  { %v160_v39 = vmul.f32 %v128_v28, %v128_v28  ;;  %v161_v44 = vmul.f32 %v129_v33, %v129_v33  ;;  %v101_v47 = vld [vmem:[#allocation5 + $0xc0] sm:$0xff]  ;;  %v102_v52 = vld [vmem:[#allocation5 + $0xc8] sm:$0xff]  ;;  %v71_v56 = vld [vmem:[#allocation2 + $0xd0] sm:$0xff] }
  0x2e   :  { %v180_v54 = vadd.f32 %v179_v49, %v148_v43  ;;  %v131_v43 = vsub.f32 %v99_v37, %v67_v36  ;;  %v162_v49 = vmul.f32 %v130_v38, %v130_v38  ;;  %v103_v57 = vld [vmem:[#allocation5 + $0xd0] sm:$0xff]  ;;  %v72_v61 = vld [vmem:[#allocation2 + $0xd8] sm:$0xff]  ;;  %v73_v2 = vld [vmem:[#allocation2 + $0xe0] sm:$0xff] }
  0x2f   :  { %v104_v62 = vld [vmem:[#allocation5 + $0xd8] sm:$0xff]  ;;  %v105_v3 = vld [vmem:[#allocation5 + $0xe0] sm:$0xff]  ;;  %v74_v7 = vld [vmem:[#allocation2 + $0xe8] sm:$0xff] }
  0x30   :  { %v181_v59 = vadd.f32 %v180_v54, %v149_v48  ;;  %v132_v48 = vsub.f32 %v100_v42, %v68_v41  ;;  %v163_v54 = vmul.f32 %v131_v43, %v131_v43  ;;  %v106_v8 = vld [vmem:[#allocation5 + $0xe8] sm:$0xff]  ;;  %v75_v12 = vld [vmem:[#allocation2 + $0xf0] sm:$0xff]  ;;  %v76_v17 = vld [vmem:[#allocation2 + $0xf8] sm:$0xff] }
  0x31   :  { %v107_v13 = vld [vmem:[#allocation5 + $0xf0] sm:$0xff]  ;;  %v108_v18 = vld [vmem:[#allocation5 + $0xf8] sm:$0xff] }
  0x32   :  { %v182_v0 = vadd.f32 %v181_v59, %v150_v53  ;;  %v133_v53 = vsub.f32 %v101_v47, %v69_v46  ;;  %v164_v59 = vmul.f32 %v132_v48, %v132_v48  ;;  %v140_v22 = vsub.f32 %v108_v18, %v76_v17 }
  0x34   :  { %v183_v5 = vadd.f32 %v182_v0, %v151_v58  ;;  %v134_v58 = vsub.f32 %v102_v52, %v70_v51  ;;  %v165_v0 = vmul.f32 %v133_v53, %v133_v53  ;;  %v172_v27 = vmul.f32 %v140_v22, %v140_v22 }
  0x36   :  { %v184_v10 = vadd.f32 %v183_v5, %v152_v63  ;;  %v135_v63 = vsub.f32 %v103_v57, %v71_v56  ;;  %v166_v5 = vmul.f32 %v134_v58, %v134_v58 }
  0x38   :  { %v185_v15 = vadd.f32 %v184_v10, %v153_v4  ;;  %v136_v4 = vsub.f32 %v104_v62, %v72_v61  ;;  %v167_v10 = vmul.f32 %v135_v63, %v135_v63 }
  0x3a   :  { %v186_v20 = vadd.f32 %v185_v15, %v154_v9  ;;  %v137_v9 = vsub.f32 %v105_v3, %v73_v2  ;;  %v168_v15 = vmul.f32 %v136_v4, %v136_v4 }
  0x3c   :  { %v187_v25 = vadd.f32 %v186_v20, %v155_v14  ;;  %v138_v14 = vsub.f32 %v106_v8, %v74_v7  ;;  %v169_v20 = vmul.f32 %v137_v9, %v137_v9 }
  0x3e   :  { %v188_v30 = vadd.f32 %v187_v25, %v156_v19  ;;  %v139_v19 = vsub.f32 %v107_v13, %v75_v12  ;;  %v170_v23 = vmul.f32 %v138_v14, %v138_v14 }
  0x40   :  { %v189_v35 = vadd.f32 %v188_v30, %v157_v24  ;;  %v171_v25 = vmul.f32 %v139_v19, %v139_v19 }
  0x42   :  { %v190_v40 = vadd.f32 %v189_v35, %v158_v29 }
  0x44   :  { %v191_v45 = vadd.f32 %v190_v40, %v159_v34 }
  0x46   :  { %v192_v50 = vadd.f32 %v191_v45, %v160_v39 }
  0x48   :  { %v193_v55 = vadd.f32 %v192_v50, %v161_v44 }
  0x4a   :  { %v194_v60 = vadd.f32 %v193_v55, %v162_v49 }
  0x4c   :  { %v195_v1 = vadd.f32 %v194_v60, %v163_v54 }
  0x4e   :  { %v196_v6 = vadd.f32 %v195_v1, %v164_v59 }
  0x50   :  { %v197_v11 = vadd.f32 %v196_v6, %v165_v0 }
  0x52   :  { %v198_v16 = vadd.f32 %v197_v11, %v166_v5 }
  0x54   :  { %v199_v21 = vadd.f32 %v198_v16, %v167_v10 }
  0x56   :  { %v200_v24 = vadd.f32 %v199_v21, %v168_v15 }
  0x58   :  { %v201_v26 = vadd.f32 %v200_v24, %v169_v20 }
  0x5a   :  { %v202_v28 = vadd.f32 %v201_v26, %v170_v23 }
  0x5c   :  { %v203_v29 = vadd.f32 %v202_v28, %v171_v25 }
  0x5e   :  { %v204_v30 = vadd.f32 %v203_v29, %v172_v27 }
  0x60   :  { %206 = vst [vmem:[#allocation7] sm:$0xff] %v204_v30 }
  0x61   :  { %280 = shalt.err (!%p277_p0)
}
  0x62   :  { %216 = dma.vmem_to_hbm [thread:$0]  %s214_s1, 128, %s326_s2, [#allocation4]  }
  0x63   :  { %293 = dma.done.wait [#allocation4], 128  }
  0x64   :  { %294 = vsyncadd [#allocation4], 4294967168 }
  0x65   :  { %220 = vsyncpa [#allocation3], 1 }
  0x66   :  { %221 = vsyncpa [#allocation6], 1 }
  0x67   :  { %222 = vsyncpa [#allocation4], 1 }

</bundles_post_ra>
